<compile_context>
chip_gen: v6e
topology: v6e:2x2x1
jax: 0.10.0
libtpu: 0.0.40
codegen_flags: <defaults>
</compile_context>

<pallas_src>
import functools

import numpy as np
import jax
import jax.numpy as jnp
from jax import lax
from jax.experimental import pallas as pl
from jax.experimental.pallas import tpu as pltpu


# ----------------------------- helpers --------------------------------------


def _round_up(x: int, m: int) -> int:
    return ((x + m - 1) // m) * m


def _vmem_limit_bytes() -> int:
    """Scoped-VMEM limit with ~25% headroom off the physical capacity."""
    cap = 64 << 20  # conservative fallback (v7x physical VMEM)
    try:
        info = pltpu.get_tpu_info()
        cap = int(getattr(info, "vmem_capacity_bytes", cap))
    except Exception:
        pass
    return max(32 << 20, min(3 * cap // 4, 100 << 20))


def _pick_tm(B: int, avail_bytes: int, row_bytes: int):
    """Largest legal batch tile (multiple of 8 sublanes, or the full batch).

    Returns None when even the minimum legal tile does not fit `avail_bytes`.
    Ensures >= 2 grid steps on the parallel axis when B > 8 (v7x has 2 TCs).
    """
    if avail_bytes < row_bytes * min(B, 8):
        return None
    if B <= 8:
        return B                                   # block dim == full dim is legal
    tm = min(512, (B // 8) * 8, int(avail_bytes // row_bytes) // 8 * 8)
    tm = max(8, tm)
    if 2 * tm > B:                                 # keep both v7x TensorCores busy
        tm = max(8, ((B + 1) // 2) // 8 * 8)
    return tm


@functools.lru_cache(maxsize=None)
def _pool_matrix_np(L: int, D: int, L_pad: int, D_pad: int):
    """Host-side {0,1} pooling matrix and per-column 1/window_len scale.

    Cached as numpy (host) so the python loop runs once per shape; device
    placement happens at call time (avoids pinning device buffers forever).
    Padded rows/cols are zero, so an unpadded/masked x stays exact.
    """
    W = np.zeros((L_pad, D_pad), dtype=np.float32)
    scale = np.zeros((1, D_pad), dtype=np.float32)
    for i in range(D):
        start = (i * L) // D                    # floor(i*L/D)
        end = -((-(i + 1) * L) // D)            # ceil((i+1)*L/D)
        W[start:end, i] = 1.0
        scale[0, i] = 1.0 / float(end - start)
    return W, scale


# ----------------------------- kernels ---------------------------------------


def _pool_dot(x, w):
    """x @ w with f32 accumulation.

    w is a bf16 {0,1} matrix.  bf16 x -> one DEFAULT bf16 MXU pass.
    f32 x -> hi/lo bf16 split, two DEFAULT bf16 passes (exact to ~16 mantissa
    bits of x because w's bf16 residual is exactly zero).
    """
    if x.dtype == jnp.float32:
        x_hi = x.astype(jnp.bfloat16)
        x_lo = (x - x_hi.astype(jnp.float32)).astype(jnp.bfloat16)
        return (jnp.dot(x_hi, w, preferred_element_type=jnp.float32)
                + jnp.dot(x_lo, w, preferred_element_type=jnp.float32))
    return jnp.dot(x, w, preferred_element_type=jnp.float32)


def _mean_resident_kernel(x_ref, w_ref, scale_ref, o_ref):
    # x_ref: (TM, L), w_ref: (L, D_pad) resident bf16, scale_ref: (1, D_pad) f32.
    acc = _pool_dot(x_ref[...], w_ref[...])
    o_ref[...] = (acc * scale_ref[...]).astype(o_ref.dtype)


def _mean_ktiled_kernel(x_ref, w_ref, scale_ref, o_ref, acc_ref, *, l_total, k_tile):
    # x_ref: (TM, TK), w_ref: (TK, D_pad), acc_ref/o_ref: (TM, D_pad).
    k = pl.program_id(1)

    @pl.when(k == 0)
    def _init():
        acc_ref[...] = jnp.zeros_like(acc_ref)

    x = x_ref[...]
    if l_total % k_tile != 0:
        # Ragged K tail: the out-of-range part of the edge block is undefined,
        # so zero it (W's padded rows are zero but 0*NaN would poison the acc).
        col = lax.broadcasted_iota(jnp.int32, x.shape, 1)
        x = jnp.where(col < l_total - k * k_tile, x, jnp.zeros_like(x))

    acc_ref[...] += _pool_dot(x, w_ref[...])

    @pl.when(k == pl.num_programs(1) - 1)
    def _store():
        o_ref[...] = (acc_ref[...] * scale_ref[...]).astype(o_ref.dtype)


# ----------------------------- wrapper ---------------------------------------


def _mean_mapper_matmul(x_flat, D: int, out_dtype, *, force_k_tiled=False, k_tile=None):
    B, L = x_flat.shape
    D_pad = _round_up(D, 128)                    # lane-dense output stores

    # Compute dtype: bf16 streams as bf16; everything else computes in f32.
    x_c = x_flat if x_flat.dtype == jnp.bfloat16 else x_flat.astype(jnp.float32)
    split_f32 = x_c.dtype == jnp.float32
    x_b = np.dtype(x_c.dtype).itemsize
    o_b = np.dtype(out_dtype).itemsize

    vmem_limit = _vmem_limit_bytes()
    budget = int(vmem_limit * 0.9)
    extra = 12 if split_f32 else 0               # in-kernel hi/lo split temporaries

    def row_bytes(tk):
        # Per batch-row VMEM: double-buffered x block + split temps
        # + double-buffered out block + f32 dot result / accumulator.
        return 2 * tk * x_b + extra * tk + 2 * D_pad * o_b + 2 * D_pad * 4

    # ---------------- resident-W path (no K axis) ----------------------------
    if not force_k_tiled:
        L_sub = _round_up(L, 16)                              # sublane-packed bf16 rows
        w_res_bytes = 2 * L_sub * D_pad * 2                   # bf16 W, 2 pipeline buffers
        tm = _pick_tm(B, budget - w_res_bytes, row_bytes(L_sub))
        if tm is not None:
            W_np, scale_np = _pool_matrix_np(L, D, L, D_pad)
            W = jnp.asarray(W_np, dtype=jnp.bfloat16)         # {0,1} -> exact in bf16
            scale = jnp.asarray(scale_np)
            out = pl.pallas_call(
                _mean_resident_kernel,
                out_shape=jax.ShapeDtypeStruct((B, D_pad), out_dtype),
                grid=(pl.cdiv(B, tm),),
                in_specs=[
                    pl.BlockSpec((tm, L), lambda i: (i, 0)),
                    pl.BlockSpec((L, D_pad), lambda i: (0, 0)),   # constant -> fetched once
                    pl.BlockSpec((1, D_pad), lambda i: (0, 0)),
                ],
                out_specs=pl.BlockSpec((tm, D_pad), lambda i: (i, 0)),
                compiler_params=pltpu.CompilerParams(
                    dimension_semantics=("parallel",),
                    vmem_limit_bytes=vmem_limit,
                ),
            )(x_c, W, scale)
            return out[:, :D] if D_pad != D else out

    # ---------------- K-tiled fallback (W too large for VMEM) ----------------
    tk_candidates = [int(k_tile)] if k_tile is not None else [2048, 1024, 512, 256, 128]
    tk, tm = None, None
    for cand in tk_candidates:
        cand = min(cand, _round_up(L, 128))
        w_tile_bytes = 2 * cand * D_pad * 2                   # bf16 W tile, double-buffered
        t = _pick_tm(B, budget - w_tile_bytes, row_bytes(cand))
        if t is not None:
            tk, tm = cand, t
            break
    if tk is None:                                            # last resort: smallest tiles
        tk, tm = min(128, _round_up(L, 128)), (B if B <= 8 else 8)

    L_pad = _round_up(L, tk)
    W_np, scale_np = _pool_matrix_np(L, D, L_pad, D_pad)      # zero rows beyond L
    W = jnp.asarray(W_np, dtype=jnp.bfloat16)
    scale = jnp.asarray(scale_np)

    out = pl.pallas_call(
        functools.partial(_mean_ktiled_kernel, l_total=L, k_tile=tk),
        out_shape=jax.ShapeDtypeStruct((B, D_pad), out_dtype),
        grid=(pl.cdiv(B, tm), L_pad // tk),
        in_specs=[
            pl.BlockSpec((tm, tk), lambda i, k: (i, k)),
            pl.BlockSpec((tk, D_pad), lambda i, k: (k, 0)),
            pl.BlockSpec((1, D_pad), lambda i, k: (0, 0)),
        ],
        out_specs=pl.BlockSpec((tm, D_pad), lambda i, k: (i, 0)),
        scratch_shapes=[pltpu.VMEM((tm, D_pad), jnp.float32)],
        compiler_params=pltpu.CompilerParams(
            dimension_semantics=("parallel", "arbitrary"),
            vmem_limit_bytes=vmem_limit,
        ),
    )(x_c, W, scale)
    return out[:, :D] if D_pad != D else out


def mean_mapper(features: jnp.ndarray, preprocessing_dim: int, *,
                force_k_tiled: bool = False, k_tile=None) -> jnp.ndarray:
    """Pallas equivalent of MeanMapper(preprocessing_dim).forward(features)."""
    B = features.shape[0]
    x_flat = features.reshape(B, -1)             # matches torch .reshape(B, 1, -1)
    return _mean_mapper_matmul(x_flat, int(preprocessing_dim), features.dtype,
                               force_k_tiled=force_k_tiled, k_tile=k_tile)


# ----------------------------- reference / test -------------------------------


def _to_np_f32(x):
    return np.asarray(jax.device_get(x)).astype(np.float32)


def _reference(features, preprocessing_dim: int):
    """Pure-numpy reference for F.adaptive_avg_pool1d semantics."""
    B = features.shape[0]
    x_flat = _to_np_f32(features).reshape(B, -1)
    L = x_flat.shape[1]
    D = preprocessing_dim
    out = np.zeros((B, D), dtype=np.float32)
    for i in range(D):
        start = (i * L) // D
        end = -((-(i + 1) * L) // D)
        out[:, i] = x_flat[:, start:end].mean(axis=1)
    return out


if __name__ == "__main__":
    key = jax.random.PRNGKey(0)

    # Case 1: equal windows (L % D == 0), f32 input.  L = 4*16*16 = 1024.
    x1 = jax.random.normal(key, (2, 4, 16, 16), dtype=jnp.float32)
    o1 = jax.block_until_ready(mean_mapper(x1, 32))
    np.testing.assert_allclose(_to_np_f32(o1), _reference(x1, 32), rtol=1e-5, atol=5e-5)

    # Case 2: ragged windows, odd L = 4*15*17 = 1020 (resident-W path, L % 128 != 0).
    x2 = jax.random.normal(jax.random.PRNGKey(1), (2, 4, 15, 17), dtype=jnp.float32)
    o2 = jax.block_until_ready(mean_mapper(x2, 24))
    np.testing.assert_allclose(_to_np_f32(o2), _reference(x2, 24), rtol=1e-5, atol=5e-5)

    # Case 3: bf16 input (single-pass bf16 MXU path, bf16 output).
    x3 = x1.astype(jnp.bfloat16)
    o3 = jax.block_until_ready(mean_mapper(x3, 32))
    np.testing.assert_allclose(_to_np_f32(o3), _reference(x3, 32), rtol=2e-2, atol=2e-2)

    # Case 4: K-tiled fallback with a ragged last K tile (exercises accumulator
    # + in-kernel tail mask; 1020 % 256 != 0).
    o4 = jax.block_until_ready(mean_mapper(x2, 24, force_k_tiled=True, k_tile=256))
    np.testing.assert_allclose(_to_np_f32(o4), _reference(x2, 24), rtol=1e-5, atol=5e-5)

    print("KERNEL_OK")
</pallas_src>

<mosaic_0001>
module attributes {stable_mosaic.version = 11 : i64} {
  func.func @_mean_resident_kernel(%arg0: i32, %arg1: memref<2x1024xf32, #tpu.memory_space<vmem>>, %arg2: memref<1024x128xbf16, #tpu.memory_space<vmem>>, %arg3: memref<1x128xf32, #tpu.memory_space<vmem>>, %arg4: memref<2x128xf32, #tpu.memory_space<vmem>>) attributes {dimension_semantics = [#tpu.dimension_semantics<parallel>], iteration_bounds = array<i64: 1>, scalar_prefetch = 0 : i64, scratch_operands = 0 : i64, tpu.core_type = #tpu.core_type<tc>, window_params = [{transform_indices = @transform_0, window_bounds = array<i64: 2, 1024>}, {pipeline_mode = #tpu.pipeline_mode<synchronous>, transform_indices = @transform_1, window_bounds = array<i64: 1024, 128>}, {pipeline_mode = #tpu.pipeline_mode<synchronous>, transform_indices = @transform_2, window_bounds = array<i64: 1, 128>}, {transform_indices = @transform_3, window_bounds = array<i64: 2, 128>}]} {
    %c0 = arith.constant 0 : index
    %c0_0 = arith.constant 0 : index
    %0 = vector.load %arg1[%c0, %c0_0] : memref<2x1024xf32, #tpu.memory_space<vmem>>, vector<2x1024xf32>
    %c0_1 = arith.constant 0 : index
    %c0_2 = arith.constant 0 : index
    %1 = vector.load %arg2[%c0_1, %c0_2] : memref<1024x128xbf16, #tpu.memory_space<vmem>>, vector<1024x128xbf16>
    %2 = arith.truncf %0 : vector<2x1024xf32> to vector<2x1024xbf16>
    %3 = arith.extf %2 : vector<2x1024xbf16> to vector<2x1024xf32>
    %4 = arith.subf %0, %3 : vector<2x1024xf32>
    %5 = arith.truncf %4 : vector<2x1024xf32> to vector<2x1024xbf16>
    %cst = arith.constant dense<0.000000e+00> : vector<2x128xf32>
    %6 = tpu.matmul %2, %1, %cst {dimension_numbers = #tpu.dot_dimension_numbers<[1], [0], [0], [1], [0, 0, 1, 1], [], []>} : vector<2x1024xbf16>, vector<1024x128xbf16>, vector<2x128xf32> -> vector<2x128xf32>
    %cst_3 = arith.constant dense<0.000000e+00> : vector<2x128xf32>
    %7 = tpu.matmul %5, %1, %cst_3 {dimension_numbers = #tpu.dot_dimension_numbers<[1], [0], [0], [1], [0, 0, 1, 1], [], []>} : vector<2x1024xbf16>, vector<1024x128xbf16>, vector<2x128xf32> -> vector<2x128xf32>
    %8 = arith.addf %6, %7 : vector<2x128xf32>
    %c0_4 = arith.constant 0 : index
    %c0_5 = arith.constant 0 : index
    %9 = vector.load %arg3[%c0_4, %c0_5] : memref<1x128xf32, #tpu.memory_space<vmem>>, vector<1x128xf32>
    %10 = vector.broadcast %9 : vector<1x128xf32> to vector<2x128xf32>
    %11 = arith.mulf %8, %10 : vector<2x128xf32>
    %c0_6 = arith.constant 0 : index
    %c0_7 = arith.constant 0 : index
    %12 = vector.load %arg4[%c0_6, %c0_7] : memref<2x128xf32, #tpu.memory_space<vmem>>, vector<2x128xf32>
    tpu.vector_store %arg4[%c0_6, %c0_7], %11 {strides = array<i32>} : memref<2x128xf32, #tpu.memory_space<vmem>>, vector<2x128xf32>,
    return
  }
  func.func @transform_0(%arg0: i32) -> (i32, i32) {
    %c0_i32 = arith.constant 0 : i32
    %c0_i32_0 = arith.constant 0 : i32
    return %arg0, %c0_i32 : i32, i32
  }
  func.func @transform_1(%arg0: i32) -> (i32, i32) {
    %c0_i32 = arith.constant 0 : i32
    %c0_i32_0 = arith.constant 0 : i32
    %c0_i32_1 = arith.constant 0 : i32
    return %c0_i32, %c0_i32_0 : i32, i32
  }
  func.func @transform_2(%arg0: i32) -> (i32, i32) {
    %c0_i32 = arith.constant 0 : i32
    %c0_i32_0 = arith.constant 0 : i32
    %c0_i32_1 = arith.constant 0 : i32
    return %c0_i32, %c0_i32_0 : i32, i32
  }
  func.func @transform_3(%arg0: i32) -> (i32, i32) {
    %c0_i32 = arith.constant 0 : i32
    %c0_i32_0 = arith.constant 0 : i32
    return %arg0, %c0_i32 : i32, i32
  }
}

</mosaic_0001>

<bundles_post_ra>
// kernel: tpu_custom_call.1
= control target key start
LH: loop header
LB: loop body
LE: loop exit
PB: predicated region body
PF: predicated region fallthrough
CT: control target
= control target key end

     0   :  { %8 = vsyncpa [#allocation3], 0  ;;  %s1778_s0 = inlined_call_operand.hbm [shape: f32[2,1024], index: 0, kind: input, shape index: {}]   ;;  %s1779_s1 = inlined_call_operand.hbm [shape: bf16[1024,128], index: 1, kind: input, shape index: {}]   ;;  %s1780_s2 = inlined_call_operand.vmem [shape: f32[1,128], index: 2, kind: input, shape index: {}]   ;;  %s1781_s3 = inlined_call_operand.hbm [shape: f32[2,128], index: 3, kind: output, shape index: {}]  }
   0x1   :  { %9 = vsyncpa [#allocation6], 0 }
   0x2   :  { %10 = vsyncpa [#allocation4], 0  ;;  %s1438_s12 = smov [#allocation2]   ;;  %s1439_s14 = smov [#allocation5]  }
   0x3   :  { %s17_s13 = sshll.u32 %s1438_s12, 4  ;;  %s26_s15 = sshll.u32 %s1439_s14, 4  ;;  %s18_s13 = int_to_ptr.vmem [resolvable:$true] %s17_s13  ;;  %s27_s15 = int_to_ptr.vmem [resolvable:$true] %s26_s15 }
   0x4   :  { %s1380_s16 = scalar_lea.vmem %s18_s13, 256  ;;  %p1385_p1 = scmp.lt.s32.totalorder %s18_s13, %s18_s13 }
   0x5   :  { %p1381_p0 = scmp.ne.s32.totalorder %s18_s13, %s1380_s16  ;;  %p1386_p2 = scmp.lt.s32.totalorder %s1380_s16, %s1380_s16 }
   0x7   :  { %p1387_p3 = por %p1386_p2, %p1385_p1 }
   0x9   :  { %p1388_p4 = pnand %p1387_p3, %p1381_p0 }
   0xb   :  { %1391 = shalt.err (!%p1388_p4)
}
   0xc   :  { %20 = dma.hbm_to_vmem [thread:$0]  %s1778_s0, 256, %s18_s13, [#allocation3]  }
   0xd   :  { %s1400_s19 = scalar_lea.vmem %s27_s15, 8192  ;;  %p1405_p6 = scmp.lt.s32.totalorder %s27_s15, %s27_s15 }
   0xe   :  { %p1401_p5 = scmp.ne.s32.totalorder %s27_s15, %s1400_s19  ;;  %p1406_p7 = scmp.lt.s32.totalorder %s1400_s19, %s1400_s19 }
  0x10   :  { %p1407_p8 = por %p1406_p7, %p1405_p6 }
  0x12   :  { %p1408_p9 = pnand %p1407_p8, %p1401_p5 }
  0x14   :  { %1411 = shalt.err (!%p1408_p9)
}
  0x15   :  { %s1440_s20 = smov 64   ;;  %s1441_s21 = smov 4  }
  0x16   :  { %32 = dma.hbm_to_vmem [thread:$0]  %s1779_s1, 8192, %s27_s15, [#allocation6], %s1440_s20, %s1440_s20, %s1441_s21  }
  0x17   :  { %1432 = dma.done.wait [#allocation3], 256  }
  0x18   :  { %1433 = vsyncadd [#allocation3], 4294967040 }
  0x19   :  { %1434 = dma.done.wait [#allocation6], 8192  }
  0x1a   :  { %1435 = vsyncadd [#allocation6], 4294959104  ;;  %v1470_v0 = vld [vmem:[#allocation5 + $0x78] sm:$0xff]   ;;  %v1481_v4 = vld [vmem:[#allocation5 + $0x70] sm:$0xff]   ;;  %v1442_v22 = vmov 1983009808   ;;  %v178_v24 = vlaneseq }
  0x1b   :  { %v1472_v1 = vld [vmem:[#allocation5 + $0xf8] sm:$0xff]   ;;  %1124 = vmatprep.subr.bf16.mxu0 %v1470_v0  ;;  %v1484_v5 = vld [vmem:[#allocation5 + $0xf0] sm:$0xff]   ;;  %v1493_v8 = vld [vmem:[#allocation5 + $0x68] sm:$0xff]   ;;  %v176_v23 = vunpack.c.l.s4 %v1442_v22  ;;  %s1443_s24 = smov [#allocation7]  }
  0x1c   :  { %v1475_v2 = vld [vmem:[#allocation5 + $0x38] sm:$0xff]   ;;  %1146 = vmatprep.subr.bf16.mxu1 %v1472_v1  ;;  %v1487_v6 = vld [vmem:[#allocation5 + $0x30] sm:$0xff]   ;;  %v1496_v9 = vld [vmem:[#allocation5 + $0xe8] sm:$0xff]   ;;  %v179_v30 = vshrl.u32 %v178_v24, 7  ;;  %s1049_s25 = sshll.u32 %s1443_s24, 4  ;;  %s1050_s25 = int_to_ptr.vmem [resolvable:$true] %s1049_s25 }
  0x1d   :  { %v1478_v3 = vld [vmem:[#allocation5 + $0xb8] sm:$0xff]   ;;  %1125 = vmatpush3.bf16.msra.mxu0 %v1475_v2  ;;  %v1490_v7 = vld [vmem:[#allocation5 + $0xb0] sm:$0xff]   ;;  %v1499_v10 = vld [vmem:[#allocation5 + $0x28] sm:$0xff]   ;;  %v177_v29 = vunpack.c.0.s8 %v176_v23  ;;  %s1412_s26 = scalar_lea.vmem %s1050_s25, 32  ;;  %p1417_p11 = scmp.lt.s32.totalorder %s1050_s25, %s1050_s25 }
  0x1e   :  { %1147 = vmatpush3.bf16.msra.mxu1 %v1478_v3  ;;  %1126 = vmatprep.subr.bf16.mxu0 %v1481_v4  ;;  %v1502_v11 = vld [vmem:[#allocation5 + $0xa8] sm:$0xff]   ;;  %v1505_v12 = vld [vmem:[#allocation5 + $0x60] sm:$0xff]   ;;  %v1517_v16 = vld [vmem:[#allocation5 + $0x58] sm:$0xff]   ;;  %p1413_p10 = scmp.ne.s32.totalorder %s1050_s25, %s1412_s26  ;;  %p1418_p12 = scmp.lt.s32.totalorder %s1412_s26, %s1412_s26 }
  0x1f   :  { %1148 = vmatprep.subr.bf16.mxu1 %v1484_v5  ;;  %v1508_v13 = vld [vmem:[#allocation5 + $0xe0] sm:$0xff]   ;;  %v1520_v17 = vld [vmem:[#allocation5 + $0xd8] sm:$0xff]   ;;  %v1529_v20 = vld [vmem:[#allocation5 + $0x50] sm:$0xff]   ;;  %v1558_v35 = vsub.s32 %v177_v29, %v179_v30 }
  0x20   :  { %v1511_v14 = vld [vmem:[#allocation5 + $0x20] sm:$0xff]   ;;  %v1523_v18 = vld [vmem:[#allocation5 + $0x18] sm:$0xff]   ;;  %v1532_v21 = vld [vmem:[#allocation5 + $0xd0] sm:$0xff]   ;;  %p1419_p13 = por %p1418_p12, %p1417_p11 }
  0x21   :  { %1127 = vmatpush3.bf16.msra.mxu0 %v1487_v6  ;;  %v1514_v15 = vld [vmem:[#allocation5 + $0xa0] sm:$0xff]   ;;  %v1526_v19 = vld [vmem:[#allocation5 + $0x98] sm:$0xff]   ;;  %v1535_v25 = vld [vmem:[#allocation5 + $0x10] sm:$0xff]  }
  0x22   :  { %1149 = vmatpush3.bf16.msra.mxu1 %v1490_v7  ;;  %1128 = vmatprep.subr.bf16.mxu0 %v1493_v8  ;;  %v1538_v26 = vld [vmem:[#allocation5 + $0x90] sm:$0xff]   ;;  %v1541_v27 = vld [vmem:[#allocation5 + $0x48] sm:$0xff]   ;;  %v1553_v33 = vld [vmem:[#allocation5 + $0x40] sm:$0xff]   ;;  %p1420_p0 = pnand %p1419_p13, %p1413_p10 }
  0x23   :  { %1150 = vmatprep.subr.bf16.mxu1 %v1496_v9  ;;  %v1544_v28 = vld [vmem:[#allocation5 + $0xc8] sm:$0xff]   ;;  %v1556_v34 = vld [vmem:[#allocation5 + $0xc0] sm:$0xff]   ;;  %v42_v38 = vld [vmem:[#allocation2] sm:$0xff] }
  0x24   :  { %v1547_v31 = vld [vmem:[#allocation5 + $0x8] sm:$0xff]   ;;  %v1561_v36 = vld [vmem:[#allocation5] sm:$0xff]   ;;  %v174_v39 = vcombine.high %v42_v38, %v42_v38  ;;  %v181_v40 = vrot.slane %v42_v38, %v1558_v35  ;;  %v1569_v41 = vld [vmem:[#allocation5 + $0x178] sm:$0xff]  }
  0x25   :  { %1129 = vmatpush3.bf16.msra.mxu0 %v1499_v10  ;;  %v1550_v32 = vld [vmem:[#allocation5 + $0x88] sm:$0xff]   ;;  %v1564_v37 = vld [vmem:[#allocation5 + $0x80] sm:$0xff]   ;;  %v1571_v42 = vld [vmem:[#allocation5 + $0x1f8] sm:$0xff]  }
  0x26   :  { %1151 = vmatpush3.bf16.msra.mxu1 %v1502_v11  ;;  %1130 = vmatprep.subr.bf16.mxu0 %v1505_v12  ;;  %v188_v43 = vrot.slane %v174_v39, %v1558_v35  ;;  %v189_v44 = vcombine.high %v181_v40, %v181_v40  ;;  %v1574_v45 = vpack.c.bf16 %v181_v40, %v181_v40  ;;  %v1592_v29 = vld [vmem:[#allocation5 + $0x138] sm:$0xff]   ;;  %v1594_v39 = vld [vmem:[#allocation5 + $0x170] sm:$0xff]  }
  0x27   :  { %1152 = vmatprep.subr.bf16.mxu1 %v1508_v13 }
  0x28   :  { %v190_v46 = vcombine.high %v188_v43, %v188_v43  ;;  %v1578_v47 = vpack.c.bf16 %v189_v44, %v189_v44  ;;  %v1580_v48 = vpack.c.bf16 %v188_v43, %v188_v43  ;;  %v224_v49 = vunpack.c.l.bf16 %v1574_v45  ;;  %v1596_v43 = vld [vmem:[#allocation5 + $0x1b8] sm:$0xff]   ;;  %v1601_v44 = vld [vmem:[#allocation5 + $0x130] sm:$0xff]  }
  0x29   :  { %1131 = vmatpush3.bf16.msra.mxu0 %v1511_v14 }
  0x2a   :  { %1153 = vmatpush3.bf16.msra.mxu1 %v1514_v15  ;;  %1132 = vmatprep.subr.bf16.mxu0 %v1517_v16  ;;  %v1583_v50 = vpack.c.bf16 %v190_v46, %v190_v46  ;;  %v225_v51 = vunpack.c.l.bf16 %v1578_v47  ;;  %v226_v52 = vunpack.c.l.bf16 %v1580_v48  ;;  %v1604_v46 = vld [vmem:[#allocation5 + $0x168] sm:$0xff]  }
  0x2b   :  { %1154 = vmatprep.subr.bf16.mxu1 %v1520_v17 }
  0x2c   :  { %v227_v53 = vunpack.c.l.bf16 %v1583_v50  ;;  %v240_v54 = vcombine.low %v224_v49, %v225_v51  ;;  %v1607_v49 = vld [vmem:[#allocation5 + $0x1b0] sm:$0xff]   ;;  %v1610_v51 = vld [vmem:[#allocation5 + $0x1e8] sm:$0xff]  }
  0x2d   :  { %1133 = vmatpush3.bf16.msra.mxu0 %v1523_v18  ;;  %1800 = vst [vmem:[#allocation11_spill] sm:$0xff] %v1610_v51 }
  0x2e   :  { %1155 = vmatpush3.bf16.msra.mxu1 %v1526_v19  ;;  %1134 = vmatprep.subr.bf16.mxu0 %v1529_v20  ;;  %v241_v55 = vcombine.low %v226_v52, %v227_v53  ;;  %v248_v56 = vrot.slane %v240_v54, %v1558_v35  ;;  %v1613_v52 = vld [vmem:[#allocation5 + $0x128] sm:$0xff]   ;;  %v1616_v53 = vld [vmem:[#allocation5 + $0x160] sm:$0xff]   ;;  %v43_v54 = vld [vmem:[#allocation2 + $0x8] sm:$0xff] }
  0x2f   :  { %1156 = vmatprep.subr.bf16.mxu1 %v1532_v21  ;;  %1801 = vst [vmem:[#allocation12_spill] sm:$0xff] %v1613_v52  ;;  %1802 = vst [vmem:[#allocation13_spill] sm:$0xff] %v1616_v53 }
  0x30   :  { %v255_v57 = vrot.slane %v241_v55, %v1558_v35  ;;  %v1619_v55 = vld [vmem:[#allocation5 + $0x1a8] sm:$0xff]  }
  0x31   :  { %1135 = vmatpush3.bf16.msra.mxu0 %v1535_v25  ;;  %1803 = vst [vmem:[#allocation14_spill] sm:$0xff] %v1619_v55 }
  0x32   :  { %1157 = vmatpush3.bf16.msra.mxu1 %v1538_v26  ;;  %1136 = vmatprep.subr.bf16.mxu0 %v1541_v27  ;;  %v256_v58 = vcombine.low %v248_v56, %v255_v57  ;;  %v191_v56 = vcombine.high %v43_v54, %v43_v54  ;;  %v198_v57 = vrot.slane %v43_v54, %v1558_v35 }
  0x33   :  { %1158 = vmatprep.subr.bf16.mxu1 %v1544_v28 }
  0x34   :  { %v276_v59 = vsub.f32 %v42_v38, %v256_v58  ;;  %v1598_v38 = vld [vmem:[#allocation5 + $0x1f0] sm:$0xff]   ;;  %v1623_v58 = vld [vmem:[#allocation5 + $0x1e0] sm:$0xff]  }
  0x35   :  { %1137 = vmatpush3.bf16.msra.mxu0 %v1547_v31  ;;  %1804 = vst [vmem:[#allocation15_spill] sm:$0xff] %v1623_v58 }
  0x36   :  { %1159 = vmatpush3.bf16.msra.mxu1 %v1550_v32  ;;  %1138 = vmatprep.subr.bf16.mxu0 %v1553_v33  ;;  %v287_v60 = vrot.slane %v276_v59, %v1558_v35  ;;  %v280_v61 = vcombine.high %v276_v59, %v276_v59  ;;  %v1626_v59 = vld [vmem:[#allocation5 + $0x120] sm:$0xff]  }
  0x37   :  { %1160 = vmatprep.subr.bf16.mxu1 %v1556_v34  ;;  %1805 = vst [vmem:[#allocation16_spill] sm:$0xff] %v1626_v59 }
  0x38   :  { %v295_v62 = vcombine.high %v287_v60, %v287_v60  ;;  %v294_v63 = vrot.slane %v280_v61, %v1558_v35  ;;  %v322_v22 = vpack.c.bf16 %v287_v60, %v287_v60  ;;  %v205_v60 = vrot.slane %v191_v56, %v1558_v35  ;;  %v1643_v56 = vld [vmem:[#allocation5 + $0x1d8] sm:$0xff]  }
  0x39   :  { %1139 = vmatpush3.bf16.msra.mxu0 %v1561_v36  ;;  %v206_v61 = vcombine.high %v198_v57, %v198_v57 }
  0x3a   :  { %1161 = vmatpush3.bf16.msra.mxu1 %v1564_v37  ;;  %1168 = vmatprep.subr.bf16.mxu0 %v1569_v41  ;;  %v323_v23 = vpack.c.bf16 %v295_v62, %v295_v62  ;;  %v296_v24 = vcombine.high %v294_v63, %v294_v63  ;;  %v324_v30 = vpack.c.bf16 %v294_v63, %v294_v63  ;;  %v1632_v63 = vld [vmem:[#allocation5 + $0x158] sm:$0xff]  }
  0x3b   :  { %1190 = vmatprep.subr.bf16.mxu1 %v1571_v42  ;;  %v1629_v62 = vpack.c.bf16 %v198_v57, %v198_v57  ;;  %1807 = vst [vmem:[#allocation18_spill] sm:$0xff] %v1632_v63  ;;  %v1646_v57 = vld [vmem:[#allocation5 + $0x118] sm:$0xff]  }
  0x3c   :  { %746 = vmatprep.mubr.bf16.mxu0 %v323_v23  ;;  %v325_v40 = vpack.c.bf16 %v296_v24, %v296_v24  ;;  %v207_v23 = vcombine.high %v205_v60, %v205_v60  ;;  %v1637_v24 = vpack.c.bf16 %v206_v61, %v206_v61  ;;  %1810 = vst [vmem:[#allocation21_spill] sm:$0xff] %v1646_v57  ;;  %v1656_v61 = vld [vmem:[#allocation5 + $0x198] sm:$0xff]  }
  0x3d   :  { %747 = vmatmul.mubr.bf16.vlgmr.msra.gmra.mxu0 %v322_v22  ;;  %1806 = vst [vmem:[#allocation17_spill] sm:$0xff] %v1629_v62  ;;  %v1635_v22 = vld [vmem:[#allocation5 + $0x1a0] sm:$0xff]   ;;  %1811 = vst [vmem:[#allocation22_spill] sm:$0xff] %v1656_v61 }
  0x3e   :  { %786 = vmatprep.mubr.bf16.mxu1 %v325_v40  ;;  %1169 = vmatpush3.bf16.msra.mxu0 %v1592_v29  ;;  %1808 = vst [vmem:[#allocation19_spill] sm:$0xff] %v1635_v22  ;;  %v228_v40 = vunpack.c.l.bf16 %v1629_v62 }
  0x3f   :  { %787 = vmatmul.mubr.bf16.vlgmr.msra.gmra.mxu1 %v324_v30  ;;  %1170 = vmatprep.subr.bf16.mxu0 %v1594_v39  ;;  %v1639_v30 = vpack.c.bf16 %v205_v60, %v205_v60  ;;  %v1653_v60 = vld [vmem:[#allocation5 + $0x150] sm:$0xff]  }
  0x40   :  { %1191 = vmatpush3.bf16.msra.mxu1 %v1596_v43 }
  0x41   :  { %1192 = vmatprep.subr.bf16.mxu1 %v1598_v38  ;;  %1809 = vst [vmem:[#allocation20_spill] sm:$0xff] %v1639_v30 }
  0x42   :  { %1171 = vmatpush3.bf16.msra.mxu0 %v1601_v44 }
  0x43   :  { %1172 = vmatprep.subr.bf16.mxu0 %v1604_v46 }
  0x44   :  { %1193 = vmatpush3.bf16.msra.mxu1 %v1607_v49 }
  0x45   :  { %1194 = vmatprep.subr.bf16.mxu1 %v1610_v51  ;;  %v1667_v51 = vld [vmem:[#allocation5 + $0x148] sm:$0xff]  }
  0x46   :  { %1173 = vmatpush3.bf16.msra.mxu0 %v1613_v52  ;;  %v230_v52 = vunpack.c.l.bf16 %v1639_v30  ;;  %1814 = vst [vmem:[#allocation25_spill] sm:$0xff] %v1667_v51 }
  0x47   :  { %1174 = vmatprep.subr.bf16.mxu0 %v1616_v53  ;;  %v1648_v53 = vpack.c.bf16 %v207_v23, %v207_v23  ;;  %v1663_v23 = vld [vmem:[#allocation5 + $0x110] sm:$0xff]  }
  0x48   :  { %1195 = vmatpush3.bf16.msra.mxu1 %v1619_v55  ;;  %v229_v55 = vunpack.c.l.bf16 %v1637_v24  ;;  %1813 = vst [vmem:[#allocation24_spill] sm:$0xff] %v1663_v23 }
  0x49   :  { %1196 = vmatprep.subr.bf16.mxu1 %v1623_v58  ;;  %v231_v62 = vunpack.c.l.bf16 %v1648_v53 }
  0x4a   :  { %1175 = vmatpush3.bf16.msra.mxu0 %v1626_v59  ;;  %v257_v58 = vcombine.low %v228_v40, %v229_v55  ;;  %v1660_v59 = vld [vmem:[#allocation5 + $0x1d0] sm:$0xff]   ;;  %v1674_v40 = vld [vmem:[#allocation5 + $0x1c8] sm:$0xff]  }
  0x4b   :  { %1176 = vmatprep.subr.bf16.mxu0 %v1632_v63  ;;  %1812 = vst [vmem:[#allocation23_spill] sm:$0xff] %v1660_v59  ;;  %v258_v30 = vcombine.low %v230_v52, %v231_v62  ;;  %1816 = vst [vmem:[#allocation27_spill] sm:$0xff] %v1674_v40  ;;  %v1683_v62 = vld [vmem:[#allocation5 + $0x188] sm:$0xff]  }
  0x4c   :  { %1197 = vmatpush3.bf16.msra.mxu1 %v1635_v22  ;;  %v265_v63 = vrot.slane %v257_v58, %v1558_v35  ;;  %v1670_v22 = vld [vmem:[#allocation5 + $0x190] sm:$0xff]   ;;  %v1680_v58 = vld [vmem:[#allocation5 + $0x140] sm:$0xff]  }
  0x4d   :  { %1198 = vmatprep.subr.bf16.mxu1 %v1643_v56  ;;  %1815 = vst [vmem:[#allocation26_spill] sm:$0xff] %v1670_v22  ;;  %v272_v55 = vrot.slane %v258_v30, %v1558_v35  ;;  %v1686_v30 = vld [vmem:[#allocation5 + $0x1c0] sm:$0xff]  }
  0x4e   :  { %1177 = vmatpush3.bf16.msra.mxu0 %v1646_v57  ;;  %v1677_v57 = vld [vmem:[#allocation5 + $0x108] sm:$0xff]  }
  0x4f   :  { %1178 = vmatprep.subr.bf16.mxu0 %v1653_v60  ;;  %1817 = vst [vmem:[#allocation28_spill] sm:$0xff] %v1677_v57  ;;  %v273_v52 = vcombine.low %v265_v63, %v272_v55  ;;  %v1694_v55 = vld [vmem:[#allocation5 + $0x180] sm:$0xff]  }
  0x50   :  { %1199 = vmatpush3.bf16.msra.mxu1 %v1656_v61 }
  0x51   :  { %1200 = vmatprep.subr.bf16.mxu1 %v1660_v59  ;;  %v277_v61 = vsub.f32 %v43_v54, %v273_v52  ;;  %v1689_v59 = vld [vmem:[#allocation5 + $0x100] sm:$0xff]  }
  0x52   :  { %1179 = vmatpush3.bf16.msra.mxu0 %v1663_v23 }
  0x53   :  { %1180 = vmatprep.subr.bf16.mxu0 %v1667_v51  ;;  %v304_v23 = vrot.slane %v277_v61, %v1558_v35  ;;  %v297_v63 = vcombine.high %v277_v61, %v277_v61 }
  0x54   :  { %1201 = vmatpush3.bf16.msra.mxu1 %v1670_v22 }
  0x55   :  { %1202 = vmatprep.subr.bf16.mxu1 %v1674_v40  ;;  %v312_v22 = vcombine.high %v304_v23, %v304_v23  ;;  %v311_v54 = vrot.slane %v297_v63, %v1558_v35  ;;  %v326_v52 = vpack.c.bf16 %v304_v23, %v304_v23 }
  0x56   :  { %1181 = vmatpush3.bf16.msra.mxu0 %v1677_v57 }
  0x57   :  { %1182 = vmatprep.subr.bf16.mxu0 %v1680_v58  ;;  %v327_v57 = vpack.c.bf16 %v312_v22, %v312_v22  ;;  %v313_v40 = vcombine.high %v311_v54, %v311_v54  ;;  %v328_v51 = vpack.c.bf16 %v311_v54, %v311_v54 }
  0x58   :  { %1203 = vmatpush3.bf16.msra.mxu1 %v1683_v62 }
  0x59   :  { %1204 = vmatprep.subr.bf16.mxu1 %v1686_v30  ;;  %826 = vmatprep.mubr.bf16.mxu0 %v327_v57  ;;  %v329_v61 = vpack.c.bf16 %v313_v40, %v313_v40 }
  0x5a   :  { %1183 = vmatpush3.bf16.msra.mxu0 %v1689_v59 }
  0x5b   :  { %1212 = vmatprep.subr.bf16.mxu0 %v1470_v0  ;;  %866 = vmatprep.mubr.bf16.mxu1 %v329_v61  ;;  %v1818_v0 = vld [vmem:[#allocation11_spill] sm:$0xff]  ;;  %v1123_v61 = vld [vmem:[%s1780_s2] ss:$0 sm:$0xff] }
  0x5c   :  { %1205 = vmatpush3.bf16.msra.mxu1 %v1694_v55 }
  0x5d   :  { %827 = vmatmul.mubr.bf16.vlgmr.msra.gmra.mxu0 %v326_v52  ;;  %1234 = vmatprep.subr.bf16.mxu1 %v1472_v1  ;;  %v1819_v1 = vld [vmem:[#allocation12_spill] sm:$0xff] }
  0x5e   :  { %1213 = vmatpush3.bf16.msra.mxu0 %v1475_v2  ;;  %906 = vmatprep.mubr.bf16.mxu0 %v1578_v47  ;;  %v1820_v2 = vld [vmem:[#allocation13_spill] sm:$0xff] }
  0x5f   :  { %867 = vmatmul.mubr.bf16.vlgmr.msra.gmra.mxu1 %v328_v51  ;;  %1214 = vmatprep.subr.bf16.mxu0 %v1481_v4  ;;  %v1822_v4 = vld [vmem:[#allocation15_spill] sm:$0xff] }
  0x60   :  { %1235 = vmatpush3.bf16.msra.mxu1 %v1478_v3  ;;  %946 = vmatprep.mubr.bf16.mxu1 %v1583_v50  ;;  %v1821_v3 = vld [vmem:[#allocation14_spill] sm:$0xff] }
  0x61   :  { %1236 = vmatprep.subr.bf16.mxu1 %v1484_v5  ;;  %v1823_v5 = vld [vmem:[#allocation16_spill] sm:$0xff] }
  0x62   :  { %1215 = vmatpush3.bf16.msra.mxu0 %v1487_v6  ;;  %v1824_v6 = vld [vmem:[#allocation18_spill] sm:$0xff] }
  0x63   :  { %1216 = vmatprep.subr.bf16.mxu0 %v1493_v8  ;;  %v1826_v8 = vld [vmem:[#allocation21_spill] sm:$0xff] }
  0x64   :  { %1237 = vmatpush3.bf16.msra.mxu1 %v1490_v7  ;;  %v1825_v7 = vld [vmem:[#allocation19_spill] sm:$0xff] }
  0x65   :  { %1238 = vmatprep.subr.bf16.mxu1 %v1496_v9  ;;  %v1827_v9 = vld [vmem:[#allocation22_spill] sm:$0xff] }
  0x66   :  { %1217 = vmatpush3.bf16.msra.mxu0 %v1499_v10  ;;  %v1828_v10 = vld [vmem:[#allocation23_spill] sm:$0xff] }
  0x67   :  { %1218 = vmatprep.subr.bf16.mxu0 %v1505_v12  ;;  %v1830_v12 = vld [vmem:[#allocation25_spill] sm:$0xff] }
  0x68   :  { %1239 = vmatpush3.bf16.msra.mxu1 %v1502_v11  ;;  %v1829_v11 = vld [vmem:[#allocation24_spill] sm:$0xff] }
  0x69   :  { %1240 = vmatprep.subr.bf16.mxu1 %v1508_v13  ;;  %v1831_v13 = vld [vmem:[#allocation26_spill] sm:$0xff] }
  0x6a   :  { %1219 = vmatpush3.bf16.msra.mxu0 %v1511_v14  ;;  %v1832_v14 = vld [vmem:[#allocation27_spill] sm:$0xff] }
  0x6b   :  { %1220 = vmatprep.subr.bf16.mxu0 %v1517_v16  ;;  %v1834_v16 = vld [vmem:[#allocation17_spill] sm:$0xff] }
  0x6c   :  { %1241 = vmatpush3.bf16.msra.mxu1 %v1514_v15  ;;  %v1833_v15 = vld [vmem:[#allocation28_spill] sm:$0xff] }
  0x6d   :  { %1242 = vmatprep.subr.bf16.mxu1 %v1520_v17  ;;  %v1835_v17 = vld [vmem:[#allocation20_spill] sm:$0xff] }
  0x6e   :  { %1221 = vmatpush3.bf16.msra.mxu0 %v1523_v18 }
  0x6f   :  { %1222 = vmatprep.subr.bf16.mxu0 %v1529_v20 }
  0x70   :  { %1243 = vmatpush3.bf16.msra.mxu1 %v1526_v19 }
  0x71   :  { %1244 = vmatprep.subr.bf16.mxu1 %v1532_v21 }
  0x72   :  { %1223 = vmatpush3.bf16.msra.mxu0 %v1535_v25 }
  0x73   :  { %1224 = vmatprep.subr.bf16.mxu0 %v1541_v27 }
  0x74   :  { %1245 = vmatpush3.bf16.msra.mxu1 %v1538_v26 }
  0x75   :  { %1246 = vmatprep.subr.bf16.mxu1 %v1544_v28 }
  0x76   :  { %1225 = vmatpush3.bf16.msra.mxu0 %v1547_v31 }
  0x77   :  { %1226 = vmatprep.subr.bf16.mxu0 %v1553_v33 }
  0x78   :  { %1247 = vmatpush3.bf16.msra.mxu1 %v1550_v32 }
  0x79   :  { %1248 = vmatprep.subr.bf16.mxu1 %v1556_v34 }
  0x7a   :  { %1227 = vmatpush3.bf16.msra.mxu0 %v1561_v36 }
  0x7b   :  { %1256 = vmatprep.subr.bf16.mxu0 %v1569_v41 }
  0x7c   :  { %1249 = vmatpush3.bf16.msra.mxu1 %v1564_v37 }
  0x7d   :  { %907 = vmatmul.mubr.bf16.vlgmr.msra.gmra.mxu0 %v1574_v45  ;;  %1278 = vmatprep.subr.bf16.mxu1 %v1571_v42 }
  0x7e   :  { %1257 = vmatpush3.bf16.msra.mxu0 %v1592_v29  ;;  %986 = vmatprep.mubr.bf16.mxu0 %v1637_v24 }
  0x7f   :  { %947 = vmatmul.mubr.bf16.vlgmr.msra.gmra.mxu1 %v1580_v48  ;;  %1258 = vmatprep.subr.bf16.mxu0 %v1594_v39 }
  0x80   :  { %1279 = vmatpush3.bf16.msra.mxu1 %v1596_v43  ;;  %1026 = vmatprep.mubr.bf16.mxu1 %v1648_v53 }
  0x81   :  { %1280 = vmatprep.subr.bf16.mxu1 %v1598_v38 }
  0x82   :  { %1259 = vmatpush3.bf16.msra.mxu0 %v1601_v44 }
  0x83   :  { %1260 = vmatprep.subr.bf16.mxu0 %v1604_v46 }
  0x84   :  { %1281 = vmatpush3.bf16.msra.mxu1 %v1607_v49 }
  0x85   :  { %1282 = vmatprep.subr.bf16.mxu1 %v1818_v0 }
  0x86   :  { %1261 = vmatpush3.bf16.msra.mxu0 %v1819_v1 }
  0x87   :  { %1262 = vmatprep.subr.bf16.mxu0 %v1820_v2 }
  0x88   :  { %1283 = vmatpush3.bf16.msra.mxu1 %v1821_v3 }
  0x89   :  { %1284 = vmatprep.subr.bf16.mxu1 %v1822_v4 }
  0x8a   :  { %1263 = vmatpush3.bf16.msra.mxu0 %v1823_v5 }
  0x8b   :  { %1264 = vmatprep.subr.bf16.mxu0 %v1824_v6 }
  0x8c   :  { %1285 = vmatpush3.bf16.msra.mxu1 %v1825_v7 }
  0x8d   :  { %1286 = vmatprep.subr.bf16.mxu1 %v1643_v56 }
  0x8e   :  { %1265 = vmatpush3.bf16.msra.mxu0 %v1826_v8 }
  0x8f   :  { %1266 = vmatprep.subr.bf16.mxu0 %v1653_v60 }
  0x90   :  { %1287 = vmatpush3.bf16.msra.mxu1 %v1827_v9 }
  0x91   :  { %1288 = vmatprep.subr.bf16.mxu1 %v1828_v10 }
  0x92   :  { %1267 = vmatpush3.bf16.msra.mxu0 %v1829_v11 }
  0x93   :  { %1268 = vmatprep.subr.bf16.mxu0 %v1830_v12 }
  0x94   :  { %1289 = vmatpush3.bf16.msra.mxu1 %v1831_v13 }
  0x95   :  { %1290 = vmatprep.subr.bf16.mxu1 %v1832_v14 }
  0x96   :  { %1269 = vmatpush3.bf16.msra.mxu0 %v1833_v15 }
  0x97   :  { %1270 = vmatprep.subr.bf16.mxu0 %v1680_v58 }
  0x98   :  { %1291 = vmatpush3.bf16.msra.mxu1 %v1683_v62 }
  0x99   :  { %1292 = vmatprep.subr.bf16.mxu1 %v1686_v30 }
  0x9a   :  { %1271 = vmatpush3.bf16.msra.mxu0 %v1689_v59 }
  0x9c   :  { %1293 = vmatpush3.bf16.msra.mxu1 %v1694_v55 }
  0x9d   :  { %987 = vmatmul.mubr.bf16.vlgmr.msra.gmra.mxu0 %v1834_v16 }
  0x9f   :  { %1027 = vmatmul.mubr.bf16.vlgmr.msra.gmra.mxu1 %v1835_v17 }
  0xfd   :  { %v1140_v18 = vpop.f32.mrf.mxu0 }
  0xff   :  { %v1162_v19 = vpop.f32.mrf.mxu1  ;;  %v1141_v20 = vpop.f32.mrf.mxu0 }
 0x100   :  { %v1142_v21 = vadd.f32 %v1141_v20, %v1140_v18 }
 0x101   :  { %v1163_v25 = vpop.f32.mrf.mxu1  ;;  %v1143_v26 = vpop.f32.mrf.mxu0 }
 0x102   :  { %v1164_v27 = vadd.f32 %v1163_v25, %v1162_v19 }
 0x103   :  { %v1165_v28 = vpop.f32.mrf.mxu1  ;;  %v1144_v31 = vpop.f32.mrf.mxu0 }
 0x104   :  { %v789_v32 = vadd.f32 %v1164_v27, %v1142_v21 }
 0x105   :  { %v1166_v33 = vpop.f32.mrf.mxu1 }
 0x11d   :  { %v1184_v34 = vpop.f32.mrf.mxu0 }
 0x11f   :  { %v1206_v35 = vpop.f32.mrf.mxu1  ;;  %v1185_v36 = vpop.f32.mrf.mxu0 }
 0x120   :  { %v1186_v49 = vadd.f32 %v1185_v36, %v1184_v34 }
 0x121   :  { %v1207_v37 = vpop.f32.mrf.mxu1  ;;  %v1187_v41 = vpop.f32.mrf.mxu0 }
 0x122   :  { %v829_v51 = vadd.f32 %v1186_v49, %v789_v32  ;;  %v1208_v53 = vadd.f32 %v1207_v37, %v1206_v35 }
 0x123   :  { %v1209_v42 = vpop.f32.mrf.mxu1  ;;  %v1188_v45 = vpop.f32.mrf.mxu0 }
 0x124   :  { %v869_v22 = vadd.f32 %v1208_v53, %v829_v51 }
 0x125   :  { %v1210_v47 = vpop.f32.mrf.mxu1 }
 0x13d   :  { %v1228_v48 = vpop.f32.mrf.mxu0 }
 0x13f   :  { %v1250_v50 = vpop.f32.mrf.mxu1  ;;  %v1229_v29 = vpop.f32.mrf.mxu0 }
 0x140   :  { %v1230_v59 = vadd.f32 %v1229_v29, %v1228_v48 }
 0x141   :  { %v1251_v39 = vpop.f32.mrf.mxu1  ;;  %v1231_v43 = vpop.f32.mrf.mxu0 }
 0x142   :  { %v909_v24 = vadd.f32 %v1230_v59, %v869_v22  ;;  %v1252_v56 = vadd.f32 %v1251_v39, %v1250_v50 }
 0x143   :  { %v1253_v38 = vpop.f32.mrf.mxu1  ;;  %v1232_v44 = vpop.f32.mrf.mxu0 }
 0x144   :  { %v949_v40 = vadd.f32 %v1252_v56, %v909_v24 }
 0x145   :  { %v1254_v46 = vpop.f32.mrf.mxu1 }
 0x15d   :  { %v1272_v57 = vpop.f32.mrf.mxu0 }
 0x15f   :  { %v1294_v60 = vpop.f32.mrf.mxu1  ;;  %v1273_v23 = vpop.f32.mrf.mxu0 }
 0x160   :  { %v1274_v58 = vadd.f32 %v1273_v23, %v1272_v57 }
 0x161   :  { %v1295_v62 = vpop.f32.mrf.mxu1  ;;  %v1275_v30 = vpop.f32.mrf.mxu0 }
 0x162   :  { %v989_v63 = vadd.f32 %v1274_v58, %v949_v40  ;;  %v1296_v55 = vadd.f32 %v1295_v62, %v1294_v60 }
 0x163   :  { %v1297_v54 = vpop.f32.mrf.mxu1  ;;  %v1276_v52 = vpop.f32.mrf.mxu0 }
 0x164   :  { %v1029_v0 = vadd.f32 %v1296_v55, %v989_v63 }
 0x165   :  { %v1298_v1 = vpop.f32.mrf.mxu1 }
 0x166   :  { %v1041_v2 = vmul.f32 %v1123_v61, %v1029_v0 }
 0x168   :  { %1042 = vst [vmem:[#allocation7] sm:$0x3] %v1041_v2 }
 0x169   :  { %1423 = shalt.err (!%p1420_p0)
}
 0x16a   :  { %1052 = dma.vmem_to_hbm [thread:$0]  %s1050_s25, 32, %s1781_s3, [#allocation4]  }
 0x16b   :  { %1436 = dma.done.wait [#allocation4], 32  }
 0x16c   :  { %1437 = vsyncadd [#allocation4], 4294967264 }
 0x16d   :  { %1056 = vsyncpa [#allocation3], 1 }
 0x16e   :  { %1057 = vsyncpa [#allocation6], 1 }
 0x16f   :  { %1058 = vsyncpa [#allocation4], 1 }

</bundles_post_ra>
